<compile_context>
chip_gen: v7x
topology: tpu7x:2x2x1
jax: 0.10.0
libtpu: 0.0.40
codegen_flags: <defaults>
</compile_context>

<pallas_src>
import functools

import jax
import jax.numpy as jnp
from jax import lax
from jax.experimental import pallas as pl
from jax.experimental.pallas import tpu as pltpu


def _ranking_loss_kernel(cos_ref, adj_ref,
                         pos_sum_ref, pos_cnt_ref, neg_sum_ref, neg_cnt_ref,
                         *, margin, block_rows, chunk_rows, lane,
                         rows_total, j_steps, masked_path):
    """Folds one (block_rows, lane) slab into four (chunk_rows, lane) f32
    accumulators that stay resident in VMEM across the reduction axis."""
    i = pl.program_id(0)   # TensorCore split (size 1 on v5e/v6e)
    j = pl.program_id(1)   # sequential reduction axis

    @pl.when(j == 0)
    def _init():
        pos_sum_ref[...] = jnp.zeros_like(pos_sum_ref)
        pos_cnt_ref[...] = jnp.zeros_like(pos_cnt_ref)
        neg_sum_ref[...] = jnp.zeros_like(neg_sum_ref)
        neg_cnt_ref[...] = jnp.zeros_like(neg_cnt_ref)

    groups = block_rows // chunk_rows
    margin_f = jnp.float32(margin)
    one_f = jnp.float32(1.0)
    zero_f = jnp.float32(0.0)
    zeros_chunk = jnp.zeros((chunk_rows, lane), jnp.float32)

    def chunk_start(g):
        start = g * chunk_rows
        if chunk_rows % 8 == 0:
            start = pl.multiple_of(start, chunk_rows)
        return start

    def chunk_contrib(start, row_mask):
        # Native-dtype compares for adjacency: no per-element cast.
        adj = adj_ref[pl.ds(start, chunk_rows), :]
        cos = cos_ref[pl.ds(start, chunk_rows), :].astype(jnp.float32)
        pos = adj > 0
        neg = adj == 0
        if row_mask is not None:
            pos = jnp.logical_and(pos, row_mask)
            neg = jnp.logical_and(neg, row_mask)
        # Selects (not multiplies): garbage rows of edge blocks, even NaN,
        # contribute exactly zero.
        p_sum = jnp.where(pos, one_f - cos, zero_f)
        n_sum = jnp.where(neg, jnp.maximum(cos - margin_f, zero_f), zero_f)
        p_cnt = pos.astype(jnp.float32)
        n_cnt = neg.astype(jnp.float32)
        return p_sum, p_cnt, n_sum, n_cnt

    def run(body_fn):
        init = (zeros_chunk, zeros_chunk, zeros_chunk, zeros_chunk)
        ps, pc, ns, nc = lax.fori_loop(0, groups, body_fn, init)
        pos_sum_ref[...] += ps
        pos_cnt_ref[...] += pc
        neg_sum_ref[...] += ns
        neg_cnt_ref[...] += nc

    def full_body(g, carry):
        ps, pc, ns, nc = chunk_contrib(chunk_start(g), None)
        a0, a1, a2, a3 = carry
        return a0 + ps, a1 + pc, a2 + ns, a3 + nc

    if not masked_path:
        # Common case: every block is full; no mask work at all.
        run(full_body)
    else:
        b = i * j_steps + j
        rem = rows_total - b * block_rows   # valid rows here (may be <= 0)

        @pl.when(rem >= block_rows)
        def _full():
            run(full_body)

        @pl.when(rem < block_rows)
        def _partial():
            # Hoisted once per (rare) partial/over-covered block.
            row_id = lax.broadcasted_iota(jnp.int32, (chunk_rows, lane), 0)

            def masked_body(g, carry):
                start = chunk_start(g)
                valid = (row_id + start) < rem
                ps, pc, ns, nc = chunk_contrib(start, valid)
                a0, a1, a2, a3 = carry
                return a0 + ps, a1 + pc, a2 + ns, a3 + nc

            run(masked_body)


def _tensorcores_per_chip():
    try:
        kind = jax.devices()[0].device_kind.lower()
    except Exception:
        return 1
    # v7x exposes 2 TensorCores per chip to a single Pallas kernel.
    return 2 if ("v7" in kind or "7x" in kind) else 1


def ranking_contrastive_loss(cosine_similarity, adjacency_matrix, margin=0.2,
                             block_rows_override=None):
    """Pallas TPU implementation of RankingContrastiveLoss.forward."""
    N = int(cosine_similarity.size)
    cos_flat = cosine_similarity.reshape(-1)
    adj_flat = adjacency_matrix.reshape(-1)

    # Lane width: widest of these dividing N (no padding copy on common
    # shapes).  Capped at 512 so the carried (8, lane) f32 accumulators stay at
    # 16 vregs total.
    lane = 128
    for cand in (512, 256, 128):
        if N % cand == 0:
            lane = cand
            break

    if N % lane != 0:
        # Rare ragged path: pad to a full row.  Padded adjacency is -1, which
        # is neither positive nor zero, so padded elements never contribute.
        pad = lane - (N % lane)
        if not (jnp.issubdtype(adj_flat.dtype, jnp.floating)
                or jnp.issubdtype(adj_flat.dtype, jnp.signedinteger)):
            adj_flat = adj_flat.astype(jnp.float32)
        cos_flat = jnp.pad(cos_flat, (0, pad))
        adj_flat = jnp.pad(adj_flat, (0, pad), constant_values=-1)

    rows = cos_flat.shape[0] // lane
    cos2 = cos_flat.reshape(rows, lane)
    adj2 = adj_flat.reshape(rows, lane)

    # ~1M elements (~4 MiB f32) per input per grid step.
    target_rows = max(8, (1 << 20) // lane)
    if block_rows_override is not None:
        block_rows = int(block_rows_override)
    elif rows > target_rows:
        block_rows = target_rows                 # multiple of 8 by construction
    elif rows >= 8:
        block_rows = (rows // 8) * 8             # any <8-row tail -> masked block
    else:
        block_rows = rows
    chunk_rows = 8 if (block_rows % 8 == 0 and block_rows >= 8) else block_rows

    num_blocks = pl.cdiv(rows, block_rows)
    # Split the block range across TensorCores only on 2-core chips (v7x).
    nsplit = 2 if (_tensorcores_per_chip() >= 2 and num_blocks >= 2) else 1
    j_steps = pl.cdiv(num_blocks, nsplit)
    masked_path = (nsplit * j_steps * block_rows != rows)

    kernel = functools.partial(
        _ranking_loss_kernel,
        margin=float(margin), block_rows=block_rows, chunk_rows=chunk_rows,
        lane=lane, rows_total=rows, j_steps=j_steps, masked_path=masked_path)

    def in_map(i, j):
        b = i * j_steps + j
        # Clamp so over-covered grid steps DMA an in-bounds block; their
        # contribution is zeroed by the masked path (rem <= 0).
        return (jnp.minimum(b, num_blocks - 1), 0)

    def out_map(i, j):
        return (i, 0, 0)

    acc_shape = jax.ShapeDtypeStruct((nsplit, chunk_rows, lane), jnp.float32)
    block_bytes = block_rows * lane * (cos2.dtype.itemsize + adj2.dtype.itemsize)
    in_bytes = cos2.size * cos2.dtype.itemsize + adj2.size * adj2.dtype.itemsize
    out_bytes = 4 * nsplit * chunk_rows * lane * 4

    # Double-buffered inputs + headroom; raises v5e's 16 MiB scoped default and
    # stays well under v7x's 64 MiB physical VMEM.
    vmem_limit = int(min(max(2 * block_bytes + (12 << 20), 32 << 20), 60 << 20))

    if nsplit == 2 and hasattr(pltpu, "CORE_PARALLEL"):
        dim_sem = (pltpu.CORE_PARALLEL, pltpu.ARBITRARY)
    elif nsplit == 2:
        dim_sem = ("parallel", "arbitrary")
    else:
        dim_sem = ("arbitrary", "arbitrary")

    outs = pl.pallas_call(
        kernel,
        out_shape=(acc_shape, acc_shape, acc_shape, acc_shape),
        grid_spec=pltpu.PrefetchScalarGridSpec(
            num_scalar_prefetch=0,
            grid=(nsplit, j_steps),
            in_specs=[
                pl.BlockSpec((block_rows, lane), in_map),
                pl.BlockSpec((block_rows, lane), in_map),
            ],
            out_specs=[pl.BlockSpec((None, chunk_rows, lane), out_map)] * 4,
        ),
        compiler_params=pltpu.CompilerParams(
            dimension_semantics=dim_sem,
            vmem_limit_bytes=vmem_limit),
        cost_estimate=pl.CostEstimate(
            flops=12 * rows * lane, transcendentals=0,
            bytes_accessed=in_bytes + out_bytes),
    )(cos2, adj2)

    # Tiny final cross-lane reductions in the wrapper.  Counts are exact in f32
    # as long as each (sublane, lane) bin stays below 2^24 (~68G elements here).
    pos_sum = jnp.sum(outs[0])
    pos_cnt = jnp.sum(outs[1])
    neg_sum = jnp.sum(outs[2])
    neg_cnt = jnp.sum(outs[3])
    # Matches torch: mean over an empty selection yields NaN (0/0) on purpose.
    return pos_sum / pos_cnt + neg_sum / neg_cnt


def _reference_loss(cos, adj, margin=0.2):
    # The torch module's boolean indexing of the (B, -1) tensors produces one
    # flat vector of all selected elements, i.e. a single GLOBAL mean per mask.
    c = cos.reshape(-1).astype(jnp.float32)
    a = adj.reshape(-1).astype(jnp.float32)
    pos = a > 0
    neg = a == 0
    pos_loss = jnp.sum(jnp.where(pos, 1.0 - c, 0.0)) / jnp.sum(pos)
    neg_loss = (jnp.sum(jnp.where(neg, jnp.maximum(c - margin, 0.0), 0.0))
                / jnp.sum(neg))
    return pos_loss + neg_loss


if __name__ == "__main__":
    key = jax.random.PRNGKey(0)
    k1, k2, k3, k4 = jax.random.split(key, 4)

    # Test 1: canonical (B, C, H, W) = (2, 4, 16, 16) shape, f32 / f32 inputs.
    cos_a = jax.random.uniform(k1, (2, 4, 16, 16), jnp.float32,
                               minval=-1.0, maxval=1.0)
    adj_a = (jax.random.uniform(k2, (2, 4, 16, 16), jnp.float32) > 0.5
             ).astype(jnp.float32)

    loss_fn = jax.jit(functools.partial(ranking_contrastive_loss, margin=0.2))
    loss_a = jax.block_until_ready(loss_fn(cos_a, adj_a))
    ref_a = _reference_loss(cos_a, adj_a, margin=0.2)
    assert jnp.allclose(loss_a, ref_a, atol=1e-5, rtol=1e-5), (loss_a, ref_a)

    # Test 2: ragged shape + forced small blocks to exercise the pad path,
    # multiple blocks, and the masked partial-block path (adjacency in
    # {-1, 0, 1} so "neither pos nor neg" elements also occur).
    cos_b = jax.random.uniform(k3, (2, 3, 20, 24), jnp.float32,
                               minval=-1.0, maxval=1.0)
    adj_b = jax.random.randint(k4, (2, 3, 20, 24), -1, 2).astype(jnp.float32)
    loss_fn_b = jax.jit(functools.partial(ranking_contrastive_loss, margin=0.2,
                                          block_rows_override=8))
    loss_b = jax.block_until_ready(loss_fn_b(cos_b, adj_b))
    ref_b = _reference_loss(cos_b, adj_b, margin=0.2)
    assert jnp.allclose(loss_b, ref_b, atol=1e-5, rtol=1e-5), (loss_b, ref_b)

    print("KERNEL_OK")
</pallas_src>

<mosaic_0001>
module attributes {stable_mosaic.version = 11 : i64} {
  func.func @_ranking_loss_kernel(%arg0: i32, %arg1: i32, %arg2: memref<4x512xf32, #tpu.memory_space<vmem>>, %arg3: memref<4x512xf32, #tpu.memory_space<vmem>>, %arg4: memref<1x4x512xf32, #tpu.memory_space<vmem>>, %arg5: memref<1x4x512xf32, #tpu.memory_space<vmem>>, %arg6: memref<1x4x512xf32, #tpu.memory_space<vmem>>, %arg7: memref<1x4x512xf32, #tpu.memory_space<vmem>>) attributes {dimension_semantics = [#tpu.dimension_semantics<arbitrary>, #tpu.dimension_semantics<arbitrary>], iteration_bounds = array<i64: 1, 1>, scalar_prefetch = 0 : i64, scratch_operands = 0 : i64, tpu.core_type = #tpu.core_type<tc>, window_params = [{transform_indices = @transform_0, window_bounds = array<i64: 4, 512>}, {transform_indices = @transform_1, window_bounds = array<i64: 4, 512>}, {transform_indices = @transform_2, window_bounds = array<i64: 1, 4, 512>}, {transform_indices = @transform_3, window_bounds = array<i64: 1, 4, 512>}, {transform_indices = @transform_4, window_bounds = array<i64: 1, 4, 512>}, {transform_indices = @transform_5, window_bounds = array<i64: 1, 4, 512>}]} {
    %c0_i32 = arith.constant 0 : i32
    %0 = arith.cmpi eq, %arg1, %c0_i32 : i32
    %1 = arith.extui %0 : i1 to i32
    %c0_i32_0 = arith.constant 0 : i32
    %2 = arith.cmpi ne, %1, %c0_i32_0 : i32
    scf.if %2 {
      %cst_32 = arith.constant 0.000000e+00 : f32
      %55 = vector.broadcast %cst_32 : f32 to vector<4x512xf32>
      %c0_33 = arith.constant 0 : index
      %c0_34 = arith.constant 0 : index
      %c0_35 = arith.constant 0 : index
      %56 = vector.load %arg4[%c0_33, %c0_34, %c0_35] : memref<1x4x512xf32, #tpu.memory_space<vmem>>, vector<1x4x512xf32>
      %57 = vector.shape_cast %56 : vector<1x4x512xf32> to vector<4x512xf32>
      %58 = vector.shape_cast %55 : vector<4x512xf32> to vector<1x4x512xf32>
      tpu.vector_store %arg4[%c0_33, %c0_34, %c0_35], %58 {strides = array<i32>} : memref<1x4x512xf32, #tpu.memory_space<vmem>>, vector<1x4x512xf32>,
      %cst_36 = arith.constant 0.000000e+00 : f32
      %59 = vector.broadcast %cst_36 : f32 to vector<4x512xf32>
      %c0_37 = arith.constant 0 : index
      %c0_38 = arith.constant 0 : index
      %c0_39 = arith.constant 0 : index
      %60 = vector.load %arg5[%c0_37, %c0_38, %c0_39] : memref<1x4x512xf32, #tpu.memory_space<vmem>>, vector<1x4x512xf32>
      %61 = vector.shape_cast %60 : vector<1x4x512xf32> to vector<4x512xf32>
      %62 = vector.shape_cast %59 : vector<4x512xf32> to vector<1x4x512xf32>
      tpu.vector_store %arg5[%c0_37, %c0_38, %c0_39], %62 {strides = array<i32>} : memref<1x4x512xf32, #tpu.memory_space<vmem>>, vector<1x4x512xf32>,
      %cst_40 = arith.constant 0.000000e+00 : f32
      %63 = vector.broadcast %cst_40 : f32 to vector<4x512xf32>
      %c0_41 = arith.constant 0 : index
      %c0_42 = arith.constant 0 : index
      %c0_43 = arith.constant 0 : index
      %64 = vector.load %arg6[%c0_41, %c0_42, %c0_43] : memref<1x4x512xf32, #tpu.memory_space<vmem>>, vector<1x4x512xf32>
      %65 = vector.shape_cast %64 : vector<1x4x512xf32> to vector<4x512xf32>
      %66 = vector.shape_cast %63 : vector<4x512xf32> to vector<1x4x512xf32>
      tpu.vector_store %arg6[%c0_41, %c0_42, %c0_43], %66 {strides = array<i32>} : memref<1x4x512xf32, #tpu.memory_space<vmem>>, vector<1x4x512xf32>,
      %cst_44 = arith.constant 0.000000e+00 : f32
      %67 = vector.broadcast %cst_44 : f32 to vector<4x512xf32>
      %c0_45 = arith.constant 0 : index
      %c0_46 = arith.constant 0 : index
      %c0_47 = arith.constant 0 : index
      %68 = vector.load %arg7[%c0_45, %c0_46, %c0_47] : memref<1x4x512xf32, #tpu.memory_space<vmem>>, vector<1x4x512xf32>
      %69 = vector.shape_cast %68 : vector<1x4x512xf32> to vector<4x512xf32>
      %70 = vector.shape_cast %67 : vector<4x512xf32> to vector<1x4x512xf32>
      tpu.vector_store %arg7[%c0_45, %c0_46, %c0_47], %70 {strides = array<i32>} : memref<1x4x512xf32, #tpu.memory_space<vmem>>, vector<1x4x512xf32>,
    } else {
    }
    %cst = arith.constant 0.000000e+00 : f32
    %3 = vector.broadcast %cst : f32 to vector<4x512xf32>
    %cst_1 = arith.constant 1.000000e+00 : f32
    %cst_2 = arith.constant 0.000000e+00 : f32
    %cst_3 = arith.constant 2.000000e-01 : f32
    %c0_i32_4 = arith.constant 0 : i32
    %c4_i32 = arith.constant 4 : i32
    %4 = arith.muli %c0_i32_4, %c4_i32 : i32
    %5 = arith.index_cast %4 : i32 to index
    %c0 = arith.constant 0 : index
    %6 = vector.load %arg3[%5, %c0] : memref<4x512xf32, #tpu.memory_space<vmem>>, vector<4x512xf32>
    %7 = arith.index_cast %4 : i32 to index
    %c0_5 = arith.constant 0 : index
    %8 = vector.load %arg2[%7, %c0_5] : memref<4x512xf32, #tpu.memory_space<vmem>>, vector<4x512xf32>
    %cst_6 = arith.constant 0.000000e+00 : f32
    %9 = vector.broadcast %cst_6 : f32 to vector<4x512xf32>
    %10 = arith.cmpf ogt, %6, %9 : vector<4x512xf32>
    %cst_7 = arith.constant 0.000000e+00 : f32
    %11 = vector.broadcast %cst_7 : f32 to vector<4x512xf32>
    %12 = arith.cmpf oeq, %6, %11 : vector<4x512xf32>
    %13 = vector.broadcast %cst_1 : f32 to vector<4x512xf32>
    %14 = arith.subf %13, %8 : vector<4x512xf32>
    %15 = vector.broadcast %cst_2 : f32 to vector<4x512xf32>
    %16 = arith.select %10, %14, %15 : vector<4x512xi1>, vector<4x512xf32>
    %17 = vector.broadcast %cst_3 : f32 to vector<4x512xf32>
    %18 = arith.subf %8, %17 : vector<4x512xf32>
    %19 = vector.broadcast %cst_2 : f32 to vector<4x512xf32>
    %20 = arith.maximumf %18, %19 : vector<4x512xf32>
    %21 = vector.broadcast %cst_2 : f32 to vector<4x512xf32>
    %22 = arith.select %12, %20, %21 : vector<4x512xi1>, vector<4x512xf32>
    %23 = arith.extui %10 : vector<4x512xi1> to vector<4x512xi32>
    %24 = arith.sitofp %23 : vector<4x512xi32> to vector<4x512xf32>
    %25 = arith.extui %12 : vector<4x512xi1> to vector<4x512xi32>
    %26 = arith.sitofp %25 : vector<4x512xi32> to vector<4x512xf32>
    %27 = arith.addf %3, %16 : vector<4x512xf32>
    %28 = arith.addf %3, %24 : vector<4x512xf32>
    %29 = arith.addf %3, %22 : vector<4x512xf32>
    %30 = arith.addf %3, %26 : vector<4x512xf32>
    %c1_i32 = arith.constant 1 : i32
    %c0_8 = arith.constant 0 : index
    %c0_9 = arith.constant 0 : index
    %c0_10 = arith.constant 0 : index
    %31 = vector.load %arg4[%c0_8, %c0_9, %c0_10] : memref<1x4x512xf32, #tpu.memory_space<vmem>>, vector<1x4x512xf32>
    %32 = vector.shape_cast %31 : vector<1x4x512xf32> to vector<4x512xf32>
    %33 = arith.addf %32, %27 : vector<4x512xf32>
    %c0_11 = arith.constant 0 : index
    %c0_12 = arith.constant 0 : index
    %c0_13 = arith.constant 0 : index
    %34 = vector.load %arg4[%c0_11, %c0_12, %c0_13] : memref<1x4x512xf32, #tpu.memory_space<vmem>>, vector<1x4x512xf32>
    %35 = vector.shape_cast %34 : vector<1x4x512xf32> to vector<4x512xf32>
    %36 = vector.shape_cast %33 : vector<4x512xf32> to vector<1x4x512xf32>
    tpu.vector_store %arg4[%c0_11, %c0_12, %c0_13], %36 {strides = array<i32>} : memref<1x4x512xf32, #tpu.memory_space<vmem>>, vector<1x4x512xf32>,
    %c0_14 = arith.constant 0 : index
    %c0_15 = arith.constant 0 : index
    %c0_16 = arith.constant 0 : index
    %37 = vector.load %arg5[%c0_14, %c0_15, %c0_16] : memref<1x4x512xf32, #tpu.memory_space<vmem>>, vector<1x4x512xf32>
    %38 = vector.shape_cast %37 : vector<1x4x512xf32> to vector<4x512xf32>
    %39 = arith.addf %38, %28 : vector<4x512xf32>
    %c0_17 = arith.constant 0 : index
    %c0_18 = arith.constant 0 : index
    %c0_19 = arith.constant 0 : index
    %40 = vector.load %arg5[%c0_17, %c0_18, %c0_19] : memref<1x4x512xf32, #tpu.memory_space<vmem>>, vector<1x4x512xf32>
    %41 = vector.shape_cast %40 : vector<1x4x512xf32> to vector<4x512xf32>
    %42 = vector.shape_cast %39 : vector<4x512xf32> to vector<1x4x512xf32>
    tpu.vector_store %arg5[%c0_17, %c0_18, %c0_19], %42 {strides = array<i32>} : memref<1x4x512xf32, #tpu.memory_space<vmem>>, vector<1x4x512xf32>,
    %c0_20 = arith.constant 0 : index
    %c0_21 = arith.constant 0 : index
    %c0_22 = arith.constant 0 : index
    %43 = vector.load %arg6[%c0_20, %c0_21, %c0_22] : memref<1x4x512xf32, #tpu.memory_space<vmem>>, vector<1x4x512xf32>
    %44 = vector.shape_cast %43 : vector<1x4x512xf32> to vector<4x512xf32>
    %45 = arith.addf %44, %29 : vector<4x512xf32>
    %c0_23 = arith.constant 0 : index
    %c0_24 = arith.constant 0 : index
    %c0_25 = arith.constant 0 : index
    %46 = vector.load %arg6[%c0_23, %c0_24, %c0_25] : memref<1x4x512xf32, #tpu.memory_space<vmem>>, vector<1x4x512xf32>
    %47 = vector.shape_cast %46 : vector<1x4x512xf32> to vector<4x512xf32>
    %48 = vector.shape_cast %45 : vector<4x512xf32> to vector<1x4x512xf32>
    tpu.vector_store %arg6[%c0_23, %c0_24, %c0_25], %48 {strides = array<i32>} : memref<1x4x512xf32, #tpu.memory_space<vmem>>, vector<1x4x512xf32>,
    %c0_26 = arith.constant 0 : index
    %c0_27 = arith.constant 0 : index
    %c0_28 = arith.constant 0 : index
    %49 = vector.load %arg7[%c0_26, %c0_27, %c0_28] : memref<1x4x512xf32, #tpu.memory_space<vmem>>, vector<1x4x512xf32>
    %50 = vector.shape_cast %49 : vector<1x4x512xf32> to vector<4x512xf32>
    %51 = arith.addf %50, %30 : vector<4x512xf32>
    %c0_29 = arith.constant 0 : index
    %c0_30 = arith.constant 0 : index
    %c0_31 = arith.constant 0 : index
    %52 = vector.load %arg7[%c0_29, %c0_30, %c0_31] : memref<1x4x512xf32, #tpu.memory_space<vmem>>, vector<1x4x512xf32>
    %53 = vector.shape_cast %52 : vector<1x4x512xf32> to vector<4x512xf32>
    %54 = vector.shape_cast %51 : vector<4x512xf32> to vector<1x4x512xf32>
    tpu.vector_store %arg7[%c0_29, %c0_30, %c0_31], %54 {strides = array<i32>} : memref<1x4x512xf32, #tpu.memory_space<vmem>>, vector<1x4x512xf32>,
    return
  }
  func.func @transform_0(%arg0: i32, %arg1: i32) -> (i32, i32) {
    %c1_i32 = arith.constant 1 : i32
    %0 = arith.muli %arg0, %c1_i32 : i32
    %1 = arith.addi %0, %arg1 : i32
    %c0_i32 = arith.constant 0 : i32
    %2 = arith.minsi %1, %c0_i32 : i32
    %c0_i32_0 = arith.constant 0 : i32
    %c0_i32_1 = arith.constant 0 : i32
    return %2, %c0_i32_0 : i32, i32
  }
  func.func @transform_1(%arg0: i32, %arg1: i32) -> (i32, i32) {
    %c1_i32 = arith.constant 1 : i32
    %0 = arith.muli %arg0, %c1_i32 : i32
    %1 = arith.addi %0, %arg1 : i32
    %c0_i32 = arith.constant 0 : i32
    %2 = arith.minsi %1, %c0_i32 : i32
    %c0_i32_0 = arith.constant 0 : i32
    %c0_i32_1 = arith.constant 0 : i32
    return %2, %c0_i32_0 : i32, i32
  }
  func.func @transform_2(%arg0: i32, %arg1: i32) -> (i32, i32, i32) {
    %c0_i32 = arith.constant 0 : i32
    %c0_i32_0 = arith.constant 0 : i32
    %c0_i32_1 = arith.constant 0 : i32
    return %arg0, %c0_i32, %c0_i32_0 : i32, i32, i32
  }
  func.func @transform_3(%arg0: i32, %arg1: i32) -> (i32, i32, i32) {
    %c0_i32 = arith.constant 0 : i32
    %c0_i32_0 = arith.constant 0 : i32
    %c0_i32_1 = arith.constant 0 : i32
    return %arg0, %c0_i32, %c0_i32_0 : i32, i32, i32
  }
  func.func @transform_4(%arg0: i32, %arg1: i32) -> (i32, i32, i32) {
    %c0_i32 = arith.constant 0 : i32
    %c0_i32_0 = arith.constant 0 : i32
    %c0_i32_1 = arith.constant 0 : i32
    return %arg0, %c0_i32, %c0_i32_0 : i32, i32, i32
  }
  func.func @transform_5(%arg0: i32, %arg1: i32) -> (i32, i32, i32) {
    %c0_i32 = arith.constant 0 : i32
    %c0_i32_0 = arith.constant 0 : i32
    %c0_i32_1 = arith.constant 0 : i32
    return %arg0, %c0_i32, %c0_i32_0 : i32, i32, i32
  }
}

</mosaic_0001>

<bundles_post_ra>
// kernel: ranking_contrastive_loss.1
= control target key start
LH: loop header
LB: loop body
LE: loop exit
PB: predicated region body
PF: predicated region fallthrough
CT: control target
= control target key end

     0   :  { %v180_v6 = vmov 0.0   ;;  %s249_s0 = inlined_call_operand.vmem [shape: f32[4,512], index: 0, kind: input, shape index: {}]   ;;  %s250_s1 = inlined_call_operand.vmem [shape: f32[4,512], index: 1, kind: input, shape index: {}]   ;;  %s251_s3 = inlined_call_operand.vmem [shape: f32[1,4,512], index: 3, kind: output, shape index: {1}]   ;;  %s252_s2 = inlined_call_operand.vmem [shape: f32[1,4,512], index: 2, kind: output, shape index: {0}]   ;;  %s253_s5 = inlined_call_operand.vmem [shape: f32[1,4,512], index: 5, kind: output, shape index: {3}]   ;;  %s254_s4 = inlined_call_operand.vmem [shape: f32[1,4,512], index: 4, kind: output, shape index: {2}]  }
   0x1   :  { %v87_v0 = vld [vmem:[%s250_s1] sm:$0xff]  ;;  %v88_v2 = vld [vmem:[%s250_s1 + $0x8] sm:$0xff] }
   0x2   :  { %v89_v1 = vld [vmem:[%s249_s0] sm:$0xff]  ;;  %vm91_vm0 = vcmp.gt.f32.partialorder %v87_v0, 0.0  ;;  %v90_v4 = vld [vmem:[%s249_s0 + $0x8] sm:$0xff]  ;;  %vm92_vm1 = vcmp.gt.f32.partialorder %v88_v2, 0.0  ;;  %vm93_vm2 = vcmp.eq.f32.partialorder %v87_v0, 0.0  ;;  %vm94_vm3 = vcmp.eq.f32.partialorder %v88_v2, 0.0 }
   0x3   :  { %v95_v3 = vsub.f32 1.0, %v89_v1  ;;  %v96_v5 = vsub.f32 1.0, %v90_v4  ;;  %v175_v7 = vsel %vm91_vm0, 1.0, %v180_v6  ;;  %v176_v8 = vsel %vm92_vm1, 1.0, %v180_v6 }
   0x4   :  { %v173_v9 = vadd.f32 -0.2, %v89_v1  ;;  %v174_v13 = vadd.f32 -0.2, %v90_v4  ;;  %131 = vst [vmem:[%s251_s3] sm:$0xff] %v175_v7  ;;  %132 = vst [vmem:[%s251_s3 + $0x8] sm:$0xff] %v176_v8  ;;  %v177_v14 = vsel %vm93_vm2, 1.0, %v180_v6 }
   0x5   :  { %v97_v10 = vsel %vm91_vm0, %v95_v3, 0.0  ;;  %v98_v11 = vsel %vm92_vm1, %v96_v5, 0.0  ;;  %v178_v15 = vsel %vm94_vm3, 1.0, %v180_v6  ;;  %143 = vst [vmem:[%s253_s5] sm:$0xff] %v177_v14 }
   0x6   :  { %v101_v12 = vmax.f32 %v173_v9, 0.0  ;;  %125 = vst [vmem:[%s252_s2] sm:$0xff] %v97_v10  ;;  %v102_v17 = vmax.f32 %v174_v13, 0.0  ;;  %126 = vst [vmem:[%s252_s2 + $0x8] sm:$0xff] %v98_v11 }
   0x7   :  { %144 = vst [vmem:[%s253_s5 + $0x8] sm:$0xff] %v178_v15 }
   0x8   :  { %v103_v16 = vsel %vm93_vm2, %v101_v12, 0.0  ;;  %v104_v18 = vsel %vm94_vm3, %v102_v17, 0.0 }
   0x9   :  { %137 = vst [vmem:[%s254_s4] sm:$0xff] %v103_v16  ;;  %138 = vst [vmem:[%s254_s4 + $0x8] sm:$0xff] %v104_v18 }

</bundles_post_ra>
